<compile_context>
chip_gen: v7x
topology: tpu7x:2x2x1
jax: 0.10.0
libtpu: 0.0.40
codegen_flags: <defaults>
</compile_context>

<pallas_src>
import functools

import jax
import jax.numpy as jnp
from jax.experimental import pallas as pl
from jax.experimental.pallas import tpu as pltpu

_MIB = 1024 * 1024


def _round_up(a: int, b: int) -> int:
    return (a + b - 1) // b * b


def _is_v5e() -> bool:
    try:
        kind = jax.devices()[0].device_kind.lower()
    except Exception:
        return False
    return ("v5 lite" in kind) or ("v5e" in kind) or ("v5lite" in kind)


def _base_tiles():
    """(tm, tn, tk) upper bounds, per TPU generation."""
    if _is_v5e():
        # Lower HBM BW + 16 MiB default scoped VMEM: 512x512 output tiles
        # (per-step intensity already above v5e's machine balance).
        return 512, 512, 1024
    # v6e / v7x (and unknown): larger output tiles for higher arithmetic
    # intensity; footprint ~19 MiB incl. cast temps.
    return 1024, 1024, 512


def _kn_tiles(K: int, N: int):
    """Weight-facing tile sizes; depend only on (K, N) so packing can be hoisted."""
    _, base_tn, base_tk = _base_tiles()
    tn = min(base_tn, _round_up(N, 128))
    tk = min(base_tk, _round_up(K, 128))
    return tn, tk


def pack_ternary_weight(w_ternary: jax.Array) -> jax.Array:
    """One-time weight prep: cast the ternary weight to int8 and pad to tile
    multiples.  Do this once at weight-load time, NOT per forward call."""
    K, N = w_ternary.shape
    tn, tk = _kn_tiles(K, N)
    Kp, Np = _round_up(K, tk), _round_up(N, tn)
    w8 = w_ternary.astype(jnp.int8)  # exact for {-1, 0, +1}, 1 byte/elem in HBM
    if (Kp, Np) != (K, N):
        w8 = jnp.pad(w8, ((0, Kp - K), (0, Np - N)))
    return w8


def _ternary_matmul_kernel(x_ref, w_ref, o_ref):
    # x_ref : (tm, tk) activation tile, streamed in its HBM dtype (f32 here).
    # w_ref : (tk, tn) int8 ternary weight tile (values in {-1, 0, +1}).
    # o_ref : (tm, tn) f32 output tile; its block index is constant across the
    #         K grid axis, so it stays resident in VMEM and is accumulated
    #         into directly (no separate accumulator scratch needed).
    @pl.when(pl.program_id(2) == 0)
    def _():
        o_ref[...] = jnp.zeros_like(o_ref)

    x = x_ref[...].astype(jnp.bfloat16)   # per-tile cast on the VPU (slack slot)
    w = w_ref[...].astype(jnp.bfloat16)   # int8 -> bf16, exact for ternary
    o_ref[...] += jnp.dot(x, w, preferred_element_type=jnp.float32)


def ternary_linear_packed(x: jax.Array, w_packed: jax.Array,
                          in_features: int, out_features: int) -> jax.Array:
    """Forward pass with a pre-packed (padded int8) ternary weight.

    x: (B, M, K), (B, K, M) or (M, K) float32/bfloat16.
    w_packed: output of pack_ternary_weight() for a (K, N) ternary weight.
    Returns (B, M, N) (or (M, N)) float32.
    """
    assert x.ndim in (2, 3), "expected rank-2 or rank-3 input"
    squeeze_batch = x.ndim == 2
    if squeeze_batch:
        x = x[None]
    # Match the module: accept (B, rows, K) or (B, K, rows).
    if x.shape[-1] != in_features:
        assert x.shape[-2] == in_features, "in_features not found on last two dims"
        x = jnp.swapaxes(x, -1, -2)
    B, M, K = x.shape
    assert K == in_features
    N = out_features

    tn, tk = _kn_tiles(K, N)
    Kp, Np = _round_up(K, tk), _round_up(N, tn)
    assert w_packed.shape == (Kp, Np), (
        f"w_packed shape {w_packed.shape} != expected padded {(Kp, Np)}")
    assert w_packed.dtype == jnp.int8

    BM = B * M
    base_tm = _base_tiles()[0]
    tm = min(base_tm, _round_up(BM, 8))
    BMp = _round_up(BM, tm)

    # Megacore (v7x has 2 TensorCores): if both parallel axes collapsed to one
    # block, split the row axis so at least one parallel axis has extent >= 2.
    if BMp // tm == 1 and Np // tn == 1 and tm % 16 == 0:
        tm //= 2

    # Stream activations in their native dtype (no wrapper cast pass); explicit
    # zero-padding keeps the K-tail reduction exact.
    x2 = x.reshape(BM, K)
    if (BMp, Kp) != (BM, K):
        x2 = jnp.pad(x2, ((0, BMp - BM), (0, Kp - K)))

    grid = (BMp // tm, Np // tn, Kp // tk)
    grid_i, grid_j, _ = grid

    cost = pl.CostEstimate(
        flops=2 * BMp * Np * Kp,
        transcendentals=0,
        bytes_accessed=(BMp * Kp * x2.dtype.itemsize * grid_j   # x re-streamed per j
                        + Kp * Np * 1 * grid_i                  # w re-streamed per i
                        + BMp * Np * 4),                        # f32 writeback
    )

    out = pl.pallas_call(
        _ternary_matmul_kernel,
        out_shape=jax.ShapeDtypeStruct((BMp, Np), jnp.float32),
        grid=grid,
        in_specs=[
            pl.BlockSpec((tm, tk), lambda i, j, k: (i, k)),
            pl.BlockSpec((tk, tn), lambda i, j, k: (k, j)),
        ],
        out_specs=pl.BlockSpec((tm, tn), lambda i, j, k: (i, j)),
        compiler_params=pltpu.CompilerParams(
            dimension_semantics=("parallel", "parallel", "arbitrary"),
            vmem_limit_bytes=40 * _MIB,   # headroom over ~19 MiB worst-case footprint
        ),
        cost_estimate=cost,
    )(x2, w_packed)

    out = out[:BM, :N].reshape(B, M, N)
    if squeeze_batch:
        out = out[0]
    return out


def ternary_linear(x: jax.Array, w_ternary: jax.Array) -> jax.Array:
    """Convenience path: packs the weight on the fly (prefer packing once)."""
    K, N = w_ternary.shape
    return ternary_linear_packed(x, pack_ternary_weight(w_ternary), K, N)


def random_ternary_weights(key, size, sparsity=0.8):
    """JAX mirror of the module's (non-uniform) random_ternary_weights.

    size = (in_features K, out_features N); values in {-1, 0, +1}.
    """
    r = jax.random.uniform(key, size, dtype=jnp.float32)
    w = jnp.zeros(size, dtype=jnp.int32)
    w = jnp.where(r < sparsity, 0, w)
    w = jnp.where((r >= sparsity) & (r < (sparsity + 1.0) / 2.0), -1, w)
    w = jnp.where(r >= (sparsity + 1.0) / 2.0, 1, w)
    return w


if __name__ == "__main__":
    key = jax.random.PRNGKey(0)
    k_w, k_x = jax.random.split(key)

    # Small shapes consistent with the module's forward contract.
    batch, rows, in_features, out_features = 2, 8, 32, 32
    sparsity = 0.8

    # TODO(synk): `bias` Parameter is declared in __init__ but never used in
    # forward(), so it is intentionally omitted here.
    w_ternary = random_ternary_weights(k_w, (in_features, out_features), sparsity)
    x = jax.random.normal(k_x, (batch, rows, in_features), dtype=jnp.float32)

    # One-time weight prep (int8 cast + tile padding) hoisted out of the
    # per-call path, per the perf review.
    w_packed = jax.block_until_ready(pack_ternary_weight(w_ternary))

    fwd = jax.jit(functools.partial(
        ternary_linear_packed, in_features=in_features, out_features=out_features))
    out = jax.block_until_ready(fwd(x, w_packed))

    # Matching-precision reference: activations rounded to bf16 (as done per
    # tile inside the kernel), ternary weight exact, f32 accumulation.
    x_bf = x.astype(jnp.bfloat16).astype(jnp.float32)
    ref = jnp.einsum("bmk,kn->bmn", x_bf, w_ternary.astype(jnp.float32))

    assert out.shape == (batch, rows, out_features)
    assert jnp.allclose(out, ref, atol=1e-2, rtol=1e-2), "mismatch vs reference"

    print("KERNEL_OK")
</pallas_src>

<mosaic_0001>
module attributes {stable_mosaic.version = 11 : i64} {
  func.func @_ternary_matmul_kernel(%arg0: i32, %arg1: i32, %arg2: i32, %arg3: memref<8x128xf32, #tpu.memory_space<vmem>>, %arg4: memref<128x128xi8, #tpu.memory_space<vmem>>, %arg5: memref<8x128xf32, #tpu.memory_space<vmem>>) attributes {dimension_semantics = [#tpu.dimension_semantics<parallel>, #tpu.dimension_semantics<parallel>, #tpu.dimension_semantics<arbitrary>], iteration_bounds = array<i64: 2, 1, 1>, scalar_prefetch = 0 : i64, scratch_operands = 0 : i64, tpu.core_type = #tpu.core_type<tc>, window_params = [{transform_indices = @transform_0, window_bounds = array<i64: 8, 128>}, {transform_indices = @transform_1, window_bounds = array<i64: 128, 128>}, {transform_indices = @transform_2, window_bounds = array<i64: 8, 128>}]} {
    %c0_i32 = arith.constant 0 : i32
    %0 = arith.cmpi eq, %arg2, %c0_i32 : i32
    %1 = arith.extui %0 : i1 to i32
    %c0_i32_0 = arith.constant 0 : i32
    %2 = arith.cmpi ne, %1, %c0_i32_0 : i32
    scf.if %2 {
      %cst_8 = arith.constant 0.000000e+00 : f32
      %11 = vector.broadcast %cst_8 : f32 to vector<8x128xf32>
      %c0_9 = arith.constant 0 : index
      %c0_10 = arith.constant 0 : index
      %12 = vector.load %arg5[%c0_9, %c0_10] : memref<8x128xf32, #tpu.memory_space<vmem>>, vector<8x128xf32>
      tpu.vector_store %arg5[%c0_9, %c0_10], %11 {strides = array<i32>} : memref<8x128xf32, #tpu.memory_space<vmem>>, vector<8x128xf32>,
    } else {
    }
    %c0 = arith.constant 0 : index
    %c0_1 = arith.constant 0 : index
    %3 = vector.load %arg3[%c0, %c0_1] : memref<8x128xf32, #tpu.memory_space<vmem>>, vector<8x128xf32>
    %4 = arith.truncf %3 : vector<8x128xf32> to vector<8x128xbf16>
    %c0_2 = arith.constant 0 : index
    %c0_3 = arith.constant 0 : index
    %5 = vector.load %arg4[%c0_2, %c0_3] : memref<128x128xi8, #tpu.memory_space<vmem>>, vector<128x128xi8>
    %6 = arith.sitofp %5 : vector<128x128xi8> to vector<128x128xbf16>
    %c0_4 = arith.constant 0 : index
    %c0_5 = arith.constant 0 : index
    %7 = vector.load %arg5[%c0_4, %c0_5] : memref<8x128xf32, #tpu.memory_space<vmem>>, vector<8x128xf32>
    %cst = arith.constant dense<0.000000e+00> : vector<8x128xf32>
    %8 = tpu.matmul %4, %6, %cst {dimension_numbers = #tpu.dot_dimension_numbers<[1], [0], [0], [1], [0, 0, 1, 1], [], []>} : vector<8x128xbf16>, vector<128x128xbf16>, vector<8x128xf32> -> vector<8x128xf32>
    %9 = arith.addf %7, %8 : vector<8x128xf32>
    %c0_6 = arith.constant 0 : index
    %c0_7 = arith.constant 0 : index
    %10 = vector.load %arg5[%c0_6, %c0_7] : memref<8x128xf32, #tpu.memory_space<vmem>>, vector<8x128xf32>
    tpu.vector_store %arg5[%c0_6, %c0_7], %9 {strides = array<i32>} : memref<8x128xf32, #tpu.memory_space<vmem>>, vector<8x128xf32>,
    return
  }
  func.func @transform_0(%arg0: i32, %arg1: i32, %arg2: i32) -> (i32, i32) {
    %c0_i32 = arith.constant 0 : i32
    return %arg0, %arg2 : i32, i32
  }
  func.func @transform_1(%arg0: i32, %arg1: i32, %arg2: i32) -> (i32, i32) {
    %c0_i32 = arith.constant 0 : i32
    return %arg2, %arg1 : i32, i32
  }
  func.func @transform_2(%arg0: i32, %arg1: i32, %arg2: i32) -> (i32, i32) {
    %c0_i32 = arith.constant 0 : i32
    return %arg0, %arg1 : i32, i32
  }
}

</mosaic_0001>

<bundles_post_ra>
// kernel: ternary_linear_packed.1
= control target key start
LH: loop header
LB: loop body
LE: loop exit
PB: predicated region body
PF: predicated region fallthrough
CT: control target
= control target key end

     0   :  { %s475_s9 = smov 0   ;;  %s477_s10 = smov 0   ;;  %s524_s0 = inlined_call_operand.vmem [shape: f32[16,128], index: 0, kind: input, shape index: {}]   ;;  %s525_s1 = inlined_call_operand.vmem [shape: s8[128,128], index: 1, kind: input, shape index: {}]   ;;  %s526_s2 = inlined_call_operand.vmem [shape: f32[16,128], index: 2, kind: output, shape index: {}]  }
   0x1   :  { %s479_s11 = smov 0  }
   0x2 LB: > { %s31_s12 = sadd.s32 1, %s452_s10  ;;  %p374_p0 = scmp.ge.s32.totalorder %s456_s11, 1  ;;  %s456_s11 = sphi %s479_s11, %s12_s11   ;;  %s452_s10 = sphi %s477_s10, %s528_s10   ;;  %s448_s9 = sphi %s475_s9, %s527_s9  }
   0x3   : > { %p33_p1 = scmp.ge.s32.totalorder %s31_s12, 2  ;;  %p153_p2 = scmp.lt.s32.totalorder %s456_s11, 3 }
   0x5   : > { %s530_s12 = smov (%p33_p1, %s31_s12), 0  ;;  %p154_p3 = pnand %p374_p0, %p153_p2 }
   0x6   : > { %v218_v0 = vld [vmem:[%s525_s1] sm:$0xff] (!%p154_p3)  ;;  %v458_v1 = vmov (!%p154_p3), 0.0   ;;  %vm459_vm0 = vmmov (!%p154_p3), 0   ;;  %v219_v4 = vld [vmem:[%s525_s1 + $0x8] sm:$0xff] (!%p154_p3)  ;;  %v220_v7 = vld [vmem:[%s525_s1 + $0x10] sm:$0xff] (!%p154_p3)  ;;  %p187_p4 = scmp.lt.s32.totalorder (!%p154_p3), %s448_s9, 1 }
   0x7   : > { %157 = sbr.rel (%p154_p3) target bundleno = 255 (0xff), region = 28  ;;  %388 = vmatprep.subr.bf16.mxu0 (!%p154_p3), %v458_v1  ;;  %v222_v2 = vunpack.c.l.s8.bf16 (!%p154_p3), %v218_v0  ;;  %404 = vmatprep.mubr.msk.bf16.mxu0 (!%p154_p3), %vm459_vm0, %v458_v1  ;;  %v223_v3 = vunpack.c.h.s8.bf16 (!%p154_p3), %v218_v0  ;;  %v224_v5 = vunpack.c.l.s8.bf16 (!%p154_p3), %v219_v4  ;;  %v225_v6 = vunpack.c.h.s8.bf16 (!%p154_p3), %v219_v4  ;;  %v221_v10 = vld [vmem:[%s525_s1 + $0x18] sm:$0xff] (!%p154_p3) }
   0x8   : > { %v226_v8 = vunpack.c.l.s8.bf16 (!%p154_p3), %v220_v7  ;;  %v227_v9 = vunpack.c.h.s8.bf16 (!%p154_p3), %v220_v7  ;;  %v228_v11 = vunpack.c.l.s8.bf16 (!%p154_p3), %v221_v10  ;;  %v229_v12 = vunpack.c.h.s8.bf16 (!%p154_p3), %v221_v10 }
   0x9   : > { %389 = vmatpush3.bf16.msra.mxu0 (!%p154_p3), %v222_v2 }
   0xa   : > { %390 = vmatprep.subr.bf16.mxu0 (!%p154_p3), %v458_v1 }
   0xd   : > { %391 = vmatpush3.bf16.msra.mxu0 (!%p154_p3), %v223_v3 }
   0xe   : > { %392 = vmatprep.subr.bf16.mxu0 %v458_v1  ;;  %s532_s9 = smov (!%p187_p4, %s448_s9), 1 }
   0xf   : > { %s375_s21 = sshll.u32 %s532_s9, 3 }
  0x10   : > { %s193_s24 = scalar_lea.vmem %s524_s0, %s375_s21  ;;  %s209_s27 = scalar_lea.vmem %s526_s2, %s375_s21 }
  0x11   : > { %393 = vmatpush3.bf16.msra.mxu0 %v224_v5  ;;  %v216_v13 = vld [vmem:[%s193_s24] sm:$0xff] }
  0x12   : > { %394 = vmatprep.subr.bf16.mxu0 %v458_v1  ;;  %v217_v14 = vpack.c.bf16 %v216_v13, %v216_v13 }
  0x15   : > { %395 = vmatpush3.bf16.msra.mxu0 %v225_v6 }
  0x16   : > { %396 = vmatprep.subr.bf16.mxu0 %v458_v1 }
  0x19   : > { %397 = vmatpush3.bf16.msra.mxu0 %v226_v8 }
  0x1a   : > { %398 = vmatprep.subr.bf16.mxu0 %v458_v1 }
  0x1d   : > { %399 = vmatpush3.bf16.msra.mxu0 %v227_v9 }
  0x1e   : > { %400 = vmatprep.subr.bf16.mxu0 %v458_v1 }
  0x21   : > { %401 = vmatpush3.bf16.msra.mxu0 %v228_v11 }
  0x22   : > { %402 = vmatprep.subr.bf16.mxu0 %v458_v1 }
  0x25   : > { %403 = vmatpush3.bf16.msra.mxu0 %v229_v12 }
  0x28   : > { %405 = vmatmul.mubr.bf16.vlgmr.msra.gmra.mrb[0].mxu0 %v217_v14 }
  0xfb   : > { %v265_v15 = vpop.f32.mrb[0].mxu0 }
  0xfc   : > { %v406_v16 = vpop.f32.mrb[1].mxu0  ;;  %272 = vst [vmem:[%s209_s27] sm:$0xff] %v265_v15 }
  0xfd   : > { %v268_v17 = vpop.f32.mrb[2].mxu0 }
  0xfe   : > { %v407_v18 = vpop.f32.mrb[3].mxu0 }
  0xff PF: > { %s12_s11 = sadd.s32 1, %s456_s11   ;;  %s527_s9 = smov %s452_s10 }
 0x100   : > { %p9_p5 = scmp.ge.s32.totalorder %s12_s11, 4   ;;  %s528_s10 = smov %s530_s12 }
 0x102   :  { %11 = sbr.rel (!%p9_p5) target bundleno = 2 (0x2), region = 65 }

</bundles_post_ra>
